<compile_context>
chip_gen: v6e
topology: v6e:2x2x1
jax: 0.10.0
libtpu: 0.0.40
codegen_flags: <defaults>
</compile_context>

<pallas_src>
import jax
import jax.numpy as jnp
from jax.experimental import pallas as pl
from jax.experimental.pallas import tpu as pltpu


# ----------------------------- kernels -------------------------------------

def _bias_lane_kernel(x_ref, b_ref, o_ref):
    # x_ref: (TR, TL)   b_ref: (1, TL)  -> bias broadcast over rows
    o_ref[...] = x_ref[...] + b_ref[...]


def _bias_row_kernel(x_ref, b_ref, o_ref):
    # x_ref: (TR, TS)   b_ref: (TR, 1) -> bias broadcast over lanes (spatial)
    o_ref[...] = x_ref[...] + b_ref[...]


# ----------------------------- device helpers -------------------------------

def _device_kind():
    try:
        return jax.devices()[0].device_kind.lower()
    except Exception:
        return ""


def _block_bytes_target():
    # v5e default scoped VMEM is 16 MiB -> stay at ~2 MiB blocks (~8-9 MiB
    # double-buffered).  v6e/v7x (32 MiB scoped) -> ~4 MiB blocks.
    return (2 << 20) if "v5" in _device_kind() else (4 << 20)


def _min_grid_steps():
    # v7x has 2 TensorCores per chip; keep >= 2 parallel grid steps so both
    # stream their own DMA/compute.
    return 2 if "v7" in _device_kind() else 1


def _compiler_params(n_axes, block_bytes):
    # x + out double-buffered (~4*block) plus bias blocks and headroom.
    vmem_limit = min(64 << 20, 6 * block_bytes + (4 << 20))
    return pltpu.CompilerParams(
        dimension_semantics=("parallel",) * n_axes,
        vmem_limit_bytes=vmem_limit)


def _cost(numel, itemsize, bias_bytes):
    return pl.CostEstimate(flops=numel, transcendentals=0,
                           bytes_accessed=2 * numel * itemsize + bias_bytes)


# ----------------------------- tiling helpers -------------------------------

_MAX_LANE = 32768          # lane-fold ceiling
_LANE_TARGET = 8192        # "wide enough" lane width for scoring


def _sublane(itemsize):
    # Native sublane packing: 8 rows f32, 16 rows bf16/f16, 32 rows int8/fp8.
    return max(8, 32 // max(1, itemsize))


def _fold_factor(n, c):
    """Fold k consecutive rows (k | n) into the lane dim so k*c is a multiple
    of 128 (unmasked stores) and reasonably wide.  Returns k."""
    if n <= 1:
        return 1
    best_score = (c % 128 == 0, min(c, _LANE_TARGET))
    best_k = 1
    k = 2
    while k <= n and k * c <= _MAX_LANE:
        if n % k == 0:
            lane = k * c
            score = (lane % 128 == 0, min(lane, _LANE_TARGET))
            if score > best_score:
                best_score, best_k = score, k
        k += 1
    return best_k


def _lane_tile(lane_total, itemsize, block_bytes):
    """Lane-tile width: full extent if a sublane-high block fits the byte
    target, else the largest multiple of 128 that does."""
    sub = _sublane(itemsize)
    max_tl = max(128, block_bytes // max(1, sub * itemsize))
    if lane_total <= max_tl:
        return lane_total                      # full extent (always legal)
    return (max_tl // 128) * 128


def _row_tile(rows, lane_tile, itemsize, block_bytes, min_steps=1):
    """Rows per block: sized from the byte target, rounded to the dtype's
    sublane multiple, optionally clamped so the grid keeps >= min_steps."""
    sub = _sublane(itemsize)
    if rows <= sub:
        return rows                            # full extent along rows
    tr = block_bytes // max(1, lane_tile * itemsize)
    tr = max(sub, (tr // sub) * sub)
    if min_steps > 1:
        cap = ((rows // min_steps) // sub) * sub
        if cap >= sub:
            tr = min(tr, cap)
    return min(tr, rows)


# ----------------------------- core paths -----------------------------------

def _lane_broadcast_add(x2d, bias_row):
    """x2d: (R, L); bias_row: (L,) broadcast over rows.  Returns (R, L)."""
    R, L = x2d.shape
    dtype = x2d.dtype
    itemsize = jnp.dtype(dtype).itemsize
    block_bytes = _block_bytes_target()
    min_steps = _min_grid_steps()

    # Lane-densify: fold k rows into the lane dim (k | R).
    k = _fold_factor(R, L)
    rows, lane = R // k, k * L
    xf = x2d.reshape(rows, lane)
    bf = bias_row.reshape(1, L)
    if k > 1:
        bf = jnp.tile(bf, (1, k))                              # (1, k*L)

    tl = _lane_tile(lane, itemsize, block_bytes)
    n_lane = pl.cdiv(lane, tl)
    eff_min = 1 if n_lane >= min_steps else min_steps
    tr = _row_tile(rows, tl, itemsize, block_bytes, eff_min)

    out = pl.pallas_call(
        _bias_lane_kernel,
        out_shape=jax.ShapeDtypeStruct((rows, lane), dtype),
        grid=(pl.cdiv(rows, tr), n_lane),
        in_specs=[
            pl.BlockSpec((tr, tl), lambda i, j: (i, j)),
            pl.BlockSpec((1, tl), lambda i, j: (0, j)),        # resident over rows
        ],
        out_specs=pl.BlockSpec((tr, tl), lambda i, j: (i, j)),
        compiler_params=_compiler_params(2, block_bytes),
        cost_estimate=_cost(rows * lane, itemsize, lane * itemsize),
    )(xf, bf)
    return out.reshape(R, L)


def _row_broadcast_add(x2d, bias_col):
    """x2d: (R, S); bias_col: (R,) broadcast over lanes.  Returns (R, S)."""
    R, S = x2d.shape
    dtype = x2d.dtype
    itemsize = jnp.dtype(dtype).itemsize
    block_bytes = _block_bytes_target()
    min_steps = _min_grid_steps()

    ts = _lane_tile(S, itemsize, block_bytes)
    n_lane = pl.cdiv(S, ts)
    eff_min = 1 if n_lane >= min_steps else min_steps
    tr = _row_tile(R, ts, itemsize, block_bytes, eff_min)

    return pl.pallas_call(
        _bias_row_kernel,
        out_shape=jax.ShapeDtypeStruct((R, S), dtype),
        grid=(pl.cdiv(R, tr), n_lane),
        in_specs=[
            pl.BlockSpec((tr, ts), lambda i, j: (i, j)),
            pl.BlockSpec((tr, 1), lambda i, j: (i, 0)),        # resident over spatial
        ],
        out_specs=pl.BlockSpec((tr, ts), lambda i, j: (i, j)),
        compiler_params=_compiler_params(2, block_bytes),
        cost_estimate=_cost(R * S, itemsize, R * itemsize),
    )(x2d, bias_col.reshape(R, 1))


# ----------------------------- wrapper --------------------------------------

def add_bias(x, bias_param):
    """bias_param has shape (C, 1), mirroring AddBias._bias."""
    C = bias_param.shape[0]
    # Match torch type promotion (e.g. bf16 x + f32 bias -> f32 result).
    out_dtype = jnp.result_type(x.dtype, bias_param.dtype)
    x = x.astype(out_dtype)
    bias_1d = bias_param.reshape(C).astype(out_dtype)

    if x.ndim == 2:
        # x: (N, C), bias broadcast along rows.
        assert x.shape[1] == C
        return _lane_broadcast_add(x, bias_1d)

    if x.ndim == 4:
        # x: (N, C, H, W) NCHW, bias broadcast over (H, W).
        N, Cx, H, W = x.shape
        assert Cx == C
        hw = H * W
        if hw >= 128 and hw % 128 == 0:
            # Dense spatial: layout-preserving (N*C, H*W) with per-row bias.
            y = _row_broadcast_add(x.reshape(N * C, hw), jnp.tile(bias_1d, (N,)))
            return y.reshape(N, C, H, W)
        # Small / ragged spatial (7x7, 14x14, ...): lane-dense slab layout so
        # stores stay unmasked and the bias block is resident across rows.
        slab = jnp.broadcast_to(bias_1d[:, None], (C, hw)).reshape(C * hw)
        y = _lane_broadcast_add(x.reshape(N, C * hw), slab)
        return y.reshape(N, C, H, W)

    # TODO(synk): PyTorch would also broadcast the (1, C, 1, 1) bias against
    # other ranks; only the 2D / 4D forward paths of the reference module are
    # implemented here.
    raise ValueError("AddBias supports 2D (N, C) or 4D (N, C, H, W) inputs")


# ----------------------------- demo / check ---------------------------------

if __name__ == "__main__":
    key = jax.random.PRNGKey(0)
    k_bias, k_x2, k_x4, k_x4s = jax.random.split(key, 4)

    C = 4
    # Module __init__ takes a 1-D bias of size C, stored internally as (C, 1).
    bias_1d = jax.random.normal(k_bias, (C,), dtype=jnp.float32)
    bias_param = bias_1d[:, None]                      # (C, 1)

    # ---- 2D path: x (N, C) ----
    x2 = jax.random.normal(k_x2, (2, C), dtype=jnp.float32)
    y2 = jax.block_until_ready(add_bias(x2, bias_param))
    ref2 = x2 + bias_1d[None, :]
    assert jnp.allclose(y2, ref2, atol=1e-6), "2D mismatch"

    # ---- 4D path, dense spatial: x (N, C, 16, 16) ----
    x4 = jax.random.normal(k_x4, (2, C, 16, 16), dtype=jnp.float32)
    y4 = jax.block_until_ready(add_bias(x4, bias_param))
    ref4 = x4 + bias_1d[None, :, None, None]
    assert jnp.allclose(y4, ref4, atol=1e-6), "4D mismatch"

    # ---- 4D path, ragged spatial (7x7 -> lane-slab layout) ----
    x4s = jax.random.normal(k_x4s, (2, C, 7, 7), dtype=jnp.float32)
    y4s = jax.block_until_ready(add_bias(x4s, bias_param))
    ref4s = x4s + bias_1d[None, :, None, None]
    assert jnp.allclose(y4s, ref4s, atol=1e-6), "4D (7x7) mismatch"

    print("KERNEL_OK")
</pallas_src>

<mosaic_0001>
module attributes {stable_mosaic.version = 11 : i64} {
  func.func @_bias_lane_kernel(%arg0: i32, %arg1: i32, %arg2: memref<1x8xf32, #tpu.memory_space<vmem>>, %arg3: memref<1x8xf32, #tpu.memory_space<vmem>>, %arg4: memref<1x8xf32, #tpu.memory_space<vmem>>) attributes {dimension_semantics = [#tpu.dimension_semantics<parallel>, #tpu.dimension_semantics<parallel>], iteration_bounds = array<i64: 1, 1>, scalar_prefetch = 0 : i64, scratch_operands = 0 : i64, tpu.core_type = #tpu.core_type<tc>, window_params = [{transform_indices = @transform_0, window_bounds = array<i64: 1, 8>}, {transform_indices = @transform_1, window_bounds = array<i64: 1, 8>}, {transform_indices = @transform_2, window_bounds = array<i64: 1, 8>}]} {
    %c0 = arith.constant 0 : index
    %c0_0 = arith.constant 0 : index
    %0 = vector.load %arg2[%c0, %c0_0] : memref<1x8xf32, #tpu.memory_space<vmem>>, vector<1x8xf32>
    %c0_1 = arith.constant 0 : index
    %c0_2 = arith.constant 0 : index
    %1 = vector.load %arg3[%c0_1, %c0_2] : memref<1x8xf32, #tpu.memory_space<vmem>>, vector<1x8xf32>
    %2 = arith.addf %0, %1 : vector<1x8xf32>
    %c0_3 = arith.constant 0 : index
    %c0_4 = arith.constant 0 : index
    %3 = vector.load %arg4[%c0_3, %c0_4] : memref<1x8xf32, #tpu.memory_space<vmem>>, vector<1x8xf32>
    tpu.vector_store %arg4[%c0_3, %c0_4], %2 {strides = array<i32>} : memref<1x8xf32, #tpu.memory_space<vmem>>, vector<1x8xf32>,
    return
  }
  func.func @transform_0(%arg0: i32, %arg1: i32) -> (i32, i32) {
    %c0_i32 = arith.constant 0 : i32
    return %arg0, %arg1 : i32, i32
  }
  func.func @transform_1(%arg0: i32, %arg1: i32) -> (i32, i32) {
    %c0_i32 = arith.constant 0 : i32
    %c0_i32_0 = arith.constant 0 : i32
    return %c0_i32, %arg1 : i32, i32
  }
  func.func @transform_2(%arg0: i32, %arg1: i32) -> (i32, i32) {
    %c0_i32 = arith.constant 0 : i32
    return %arg0, %arg1 : i32, i32
  }
}

</mosaic_0001>

<bundles_post_ra>
// kernel: tpu_custom_call.1
= control target key start
LH: loop header
LB: loop body
LE: loop exit
PB: predicated region body
PF: predicated region fallthrough
CT: control target
= control target key end

     0   :  { %7 = vsyncpa [#allocation3], 0  ;;  %s116_s0 = inlined_call_operand.hbm [shape: f32[1,8], index: 0, kind: input, shape index: {}]   ;;  %s117_s1 = inlined_call_operand.vmem [shape: f32[1,8], index: 1, kind: input, shape index: {}]   ;;  %s118_s2 = inlined_call_operand.hbm [shape: f32[1,8], index: 2, kind: output, shape index: {}]  }
   0x1   :  { %8 = vsyncpa [#allocation4], 0  ;;  %s90_s9 = smov [#allocation2]  }
   0x2   :  { %s15_s10 = sshll.u32 %s90_s9, 4  ;;  %s16_s10 = int_to_ptr.vmem [resolvable:$true] %s15_s10 }
   0x3   :  { %s54_s11 = scalar_lea.vmem %s16_s10, 16  ;;  %s58_s12 = scalar_lea.vmem %s16_s10, 32 }
   0x4   :  { %p55_p0 = scmp.ne.s32.totalorder %s16_s10, %s54_s11  ;;  %p59_p1 = scmp.lt.s32.totalorder %s16_s10, %s16_s10 }
   0x5   :  { %p60_p2 = scmp.lt.s32.totalorder %s58_s12, %s54_s11 }
   0x7   :  { %p61_p3 = por %p60_p2, %p59_p1 }
   0x9   :  { %p62_p4 = pnand %p61_p3, %p55_p0 }
   0xb   :  { %65 = shalt.err (!%p62_p4)
}
   0xc   :  { %18 = dma.hbm_to_vmem [thread:$0]  %s116_s0, 16, %s16_s10, [#allocation3]  }
   0xd   :  { %86 = dma.done.wait [#allocation3], 16  }
   0xe   :  { %87 = vsyncadd [#allocation3], 4294967280  ;;  %s91_s15 = smov [#allocation5]   ;;  %v24_v0 = vld [vmem:[#allocation2] sm:$0x1]  ;;  %vm27_vm0 = vcmask 57344  }
   0xf   :  { %s35_s16 = sshll.u32 %s91_s15, 4  ;;  %v25_v1 = vld [vmem:[%s117_s1] sm:$0x1]  ;;  %s36_s16 = int_to_ptr.vmem [resolvable:$true] %s35_s16 }
  0x10   :  { %v26_v2 = vadd.f32 %v25_v1, %v24_v0  ;;  %s66_s19 = scalar_lea.vmem %s36_s16, 16  ;;  %s70_s20 = scalar_lea.vmem %s36_s16, 32 }
  0x11   :  { %p67_p5 = scmp.ne.s32.totalorder %s36_s16, %s66_s19  ;;  %p71_p6 = scmp.lt.s32.totalorder %s36_s16, %s36_s16 }
  0x12   :  { %28 = vst.msk [vmem:[#allocation5] sm:$0x1] %vm27_vm0, %v26_v2  ;;  %p72_p7 = scmp.lt.s32.totalorder %s70_s20, %s66_s19 }
  0x14   :  { %p73_p8 = por %p72_p7, %p71_p6 }
  0x16   :  { %p74_p9 = pnand %p73_p8, %p67_p5 }
  0x18   :  { %77 = shalt.err (!%p74_p9)
}
  0x19   :  { %38 = dma.vmem_to_hbm [thread:$0]  %s36_s16, 16, %s118_s2, [#allocation4]  }
  0x1a   :  { %88 = dma.done.wait [#allocation4], 16  }
  0x1b   :  { %89 = vsyncadd [#allocation4], 4294967280 }
  0x1c   :  { %42 = vsyncpa [#allocation3], 1 }
  0x1d   :  { %43 = vsyncpa [#allocation4], 1 }

</bundles_post_ra>
